<compile_context>
chip_gen: v5e
topology: v5e:2x2
jax: 0.10.0
libtpu: 0.0.40
codegen_flags: <defaults>
</compile_context>

<pallas_src>
import jax
import jax.numpy as jnp
from jax.experimental import pallas as pl
from jax.experimental.pallas import tpu as pltpu


def _bloom_gelu_kernel(x_ref, o_ref):
    # Bloom GELU: x * 0.5 * (1 + tanh(0.79788456 * x * (1 + 0.044715 * x^2)))
    xf = x_ref[...].astype(jnp.float32)
    inner = 0.79788456 * xf * (1.0 + 0.044715 * xf * xf)
    y = xf * 0.5 * (1.0 + jnp.tanh(inner))            # tanh rides the EUP slot
    o_ref[...] = y.astype(o_ref.dtype)


def _vmem_capacity_bytes():
    """Per-core VMEM capacity (generation-aware) with a conservative fallback."""
    try:
        info = pltpu.get_tpu_info()
        cap = int(getattr(info, "vmem_capacity_bytes", 0))
        if cap > 0:
            return cap
    except Exception:
        pass
    return 64 << 20   # v7x per-TC size: safe lower bound for all generations


def _sublane_align(dtype):
    """Native sublane packing: 8 rows for 4-byte, 16 for 2-byte, 32 for 1-byte."""
    itemsize = jnp.dtype(dtype).itemsize
    return max(8, 32 // max(1, itemsize))


def _choose_lane_width(n_elems):
    """Largest power-of-two multiple of 128 (<= 8192) dividing n_elems."""
    for c in (8192, 4096, 2048, 1024, 512, 256, 128):
        if n_elems % c == 0:
            return c
    return None


def _launch(x2, tr):
    rows, cols = x2.shape
    itemsize = jnp.dtype(x2.dtype).itemsize
    tile_bytes = tr * cols * itemsize
    vmem_cap = _vmem_capacity_bytes()
    # 4 live buffers (in + out, double-buffered) + ~4 MiB headroom, bounded to
    # half the physical VMEM of this generation.
    vmem_limit = int(min(vmem_cap // 2, max(16 << 20, 4 * tile_bytes + (4 << 20))))

    return pl.pallas_call(
        _bloom_gelu_kernel,
        out_shape=jax.ShapeDtypeStruct((rows, cols), x2.dtype),
        grid_spec=pltpu.PrefetchScalarGridSpec(
            num_scalar_prefetch=0,
            grid=(pl.cdiv(rows, tr),),
            in_specs=[pl.BlockSpec((tr, cols), lambda i: (i, 0))],
            out_specs=pl.BlockSpec((tr, cols), lambda i: (i, 0)),
        ),
        compiler_params=pltpu.CompilerParams(
            dimension_semantics=("parallel",),
            vmem_limit_bytes=vmem_limit,
        ),
    )(x2)


def bloom_gelu(x):
    """Elementwise Bloom GELU: x * 0.5 * (1 + tanh(0.79788456*x*(1+0.044715*x*x)))."""
    orig_shape = x.shape
    n = x.size
    if n == 0:
        return x
    dtype = x.dtype
    itemsize = jnp.dtype(dtype).itemsize
    align = _sublane_align(dtype)
    vmem_cap = _vmem_capacity_bytes()
    # Per-buffer tile target: as large as possible while the pipelined footprint
    # stays well inside VMEM (v5e/v6e -> 8 MiB tiles, v7x -> 4 MiB tiles).
    target_tile_bytes = int(min(8 << 20, max(2 << 20, vmem_cap // 16)))

    lane_c = _choose_lane_width(n)
    padded = False
    if lane_c is not None:
        cols = lane_c
        x2 = x.reshape(n // cols, cols)
    else:
        # Ragged: pad the flat array to a lane-dense multiple of 1024 so stores
        # stay wide unmasked vst, then slice the padding off afterwards.
        cols = 1024
        n_pad = ((n + cols - 1) // cols) * cols
        x2 = jnp.pad(x.reshape(-1), (0, n_pad - n)).reshape(n_pad // cols, cols)
        padded = True

    rows = x2.shape[0]
    # Row tiling: each block is a fully contiguous (tr, cols) HBM slab.
    tr_cap = max(align, (target_tile_bytes // (cols * itemsize)) // align * align)
    tr = rows if rows <= tr_cap else tr_cap
    # Guarantee >=2 grid steps for large tensors so the 'parallel' axis can be
    # sharded across both TensorCores on v7x.
    if rows <= tr_cap and rows >= 2 * align and x2.size * itemsize >= (1 << 20):
        tr = (((rows + 1) // 2) + align - 1) // align * align

    out = _launch(x2, tr)
    if padded:
        out = out.reshape(-1)[:n]
    return out.reshape(orig_shape)


def _reference(x):
    xf = x.astype(jnp.float32)
    y = xf * 0.5 * (1.0 + jnp.tanh(0.79788456 * xf * (1.0 + 0.044715 * xf * xf)))
    return y.astype(x.dtype)


if __name__ == "__main__":
    key = jax.random.PRNGKey(0)
    # Shape consistent with a transformer activation: (batch=2, seq=8, hidden=32)
    x = jax.random.normal(key, (2, 8, 32), dtype=jnp.float32)

    y = bloom_gelu(x)
    jax.block_until_ready(y)
    assert jnp.allclose(y, _reference(x), atol=1e-5, rtol=1e-5), "mismatch vs reference"

    # Exercise the ragged / non-128-divisible (padded) path.
    x_odd = jax.random.normal(key, (3, 5, 33), dtype=jnp.float32)
    y_odd = bloom_gelu(x_odd)
    jax.block_until_ready(y_odd)
    assert jnp.allclose(y_odd, _reference(x_odd), atol=1e-5, rtol=1e-5), \
        "mismatch vs reference (padded path)"

    # Exercise a bf16 input (f32 internal math, bf16 load/store).
    x_bf = jax.random.normal(key, (2, 8, 32), dtype=jnp.bfloat16)
    y_bf = bloom_gelu(x_bf)
    jax.block_until_ready(y_bf)
    assert jnp.allclose(y_bf.astype(jnp.float32),
                        _reference(x_bf).astype(jnp.float32),
                        atol=2e-2, rtol=2e-2), "mismatch vs reference (bf16)"

    print("KERNEL_OK")
</pallas_src>

<mosaic_0001>
module attributes {stable_mosaic.version = 11 : i64} {
  func.func @_bloom_gelu_kernel(%arg0: i32, %arg1: memref<1x512xf32, #tpu.memory_space<vmem>>, %arg2: memref<1x512xf32, #tpu.memory_space<vmem>>) attributes {dimension_semantics = [#tpu.dimension_semantics<parallel>], iteration_bounds = array<i64: 1>, scalar_prefetch = 0 : i64, scratch_operands = 0 : i64, tpu.core_type = #tpu.core_type<tc>, window_params = [{transform_indices = @transform_0, window_bounds = array<i64: 1, 512>}, {transform_indices = @transform_1, window_bounds = array<i64: 1, 512>}]} {
    %c0 = arith.constant 0 : index
    %c0_0 = arith.constant 0 : index
    %0 = vector.load %arg1[%c0, %c0_0] : memref<1x512xf32, #tpu.memory_space<vmem>>, vector<1x512xf32>
    %cst = arith.constant 0.797884583 : f32
    %1 = vector.broadcast %cst : f32 to vector<1x512xf32>
    %2 = arith.mulf %1, %0 : vector<1x512xf32>
    %cst_1 = arith.constant 4.471500e-02 : f32
    %3 = vector.broadcast %cst_1 : f32 to vector<1x512xf32>
    %4 = arith.mulf %3, %0 : vector<1x512xf32>
    %5 = arith.mulf %4, %0 : vector<1x512xf32>
    %cst_2 = arith.constant 1.000000e+00 : f32
    %6 = vector.broadcast %cst_2 : f32 to vector<1x512xf32>
    %7 = arith.addf %6, %5 : vector<1x512xf32>
    %8 = arith.mulf %2, %7 : vector<1x512xf32>
    %cst_3 = arith.constant 5.000000e-01 : f32
    %9 = vector.broadcast %cst_3 : f32 to vector<1x512xf32>
    %10 = arith.mulf %0, %9 : vector<1x512xf32>
    %11 = math.tanh %8 : vector<1x512xf32>
    %cst_4 = arith.constant 1.000000e+00 : f32
    %12 = vector.broadcast %cst_4 : f32 to vector<1x512xf32>
    %13 = arith.addf %12, %11 : vector<1x512xf32>
    %14 = arith.mulf %10, %13 : vector<1x512xf32>
    %c0_5 = arith.constant 0 : index
    %c0_6 = arith.constant 0 : index
    %15 = vector.load %arg2[%c0_5, %c0_6] : memref<1x512xf32, #tpu.memory_space<vmem>>, vector<1x512xf32>
    tpu.vector_store %arg2[%c0_5, %c0_6], %14 {strides = array<i32>} : memref<1x512xf32, #tpu.memory_space<vmem>>, vector<1x512xf32>,
    return
  }
  func.func @transform_0(%arg0: i32) -> (i32, i32) {
    %c0_i32 = arith.constant 0 : i32
    %c0_i32_0 = arith.constant 0 : i32
    return %arg0, %c0_i32 : i32, i32
  }
  func.func @transform_1(%arg0: i32) -> (i32, i32) {
    %c0_i32 = arith.constant 0 : i32
    %c0_i32_0 = arith.constant 0 : i32
    return %arg0, %c0_i32 : i32, i32
  }
}

</mosaic_0001>

<bundles_post_ra>
// kernel: tpu_custom_call.1
= control target key start
LH: loop header
LB: loop body
LE: loop exit
PB: predicated region body
PF: predicated region fallthrough
CT: control target
= control target key end

     0   :  { %6 = vsyncpa [#allocation3], 0  ;;  %s129_s0 = inlined_call_operand.hbm [shape: f32[1,512], index: 0, kind: input, shape index: {}]   ;;  %s130_s1 = inlined_call_operand.hbm [shape: f32[1,512], index: 1, kind: output, shape index: {}]  }
   0x1   :  { %7 = vsyncpa [#allocation4], 0  ;;  %s13_s8 = sshll.u32 %s129_s0, 4  ;;  %s111_s9 = smov [#allocation2]   ;;  %s14_s8 = int_to_ptr.hbm [resolvable:$true] %s13_s8 }
   0x2   :  { %s15_s10 = sshll.u32 %s111_s9, 4  ;;  %s16_s10 = int_to_ptr.vmem [resolvable:$true] %s15_s10 }
   0x3   :  { %18 = dma.hbm_to_vmem [thread:$0]  %s14_s8, 64, %s16_s10, [#allocation3]  }
   0x4   :  { %107 = dma.done.wait [#allocation3], 64  }
   0x5   :  { %108 = vsyncadd [#allocation3], 4294967232  ;;  %v23_v0 = vld [vmem:[#allocation2] sm:$0xf]  ;;  %v33_v6 = vlaneseq  ;;  %s112_s11 = smov [#allocation5]   ;;  %s45_s14 = sshll.u32 %s130_s1, 4  ;;  %s46_s14 = int_to_ptr.hbm [resolvable:$true] %s45_s14 }
   0x6   :  { %v25_v1 = vmul.f32 0.044715, %v23_v0  ;;  %v24_v2 = vmul.f32 0.7978846, %v23_v0  ;;  %v29_v7 = vmul.f32 0.5, %v23_v0  ;;  %s43_s12 = sshll.u32 %s112_s11, 4  ;;  %s44_s12 = int_to_ptr.vmem [resolvable:$true] %s43_s12 }
   0x7   :  { %vm35_vm0 = vcmp.lt.s32.totalorder %v33_v6, 512 }
   0x8   :  { %v26_v3 = vmul.f32 %v25_v1, %v23_v0 }
   0xa   :  { %v27_v4 = vadd.f32 1.0, %v26_v3 }
   0xc   :  { %v28_v5 = vmul.f32 %v27_v4, %v24_v2 }
   0xe   :  { %57 = vtanh.f32 %v28_v5 }
  0x14   :  { %v58_v8 = vpop.eup %57 }
  0x15   :  { %v31_v9 = vadd.f32 1.0, %v58_v8 }
  0x17   :  { %v32_v10 = vmul.f32 %v31_v9, %v29_v7 }
  0x19   :  { %37 = vst.msk [vmem:[#allocation5] sm:$0xf] %vm35_vm0, %v32_v10 }
  0x1a   :  { %48 = dma.vmem_to_hbm [thread:$0]  %s44_s12, 64, %s46_s14, [#allocation4]  }
  0x1b   :  { %109 = dma.done.wait [#allocation4], 64  }
  0x1c   :  { %110 = vsyncadd [#allocation4], 4294967232 }
  0x1d   :  { %53 = vsyncpa [#allocation3], 1 }
  0x1e   :  { %54 = vsyncpa [#allocation4], 1 }

</bundles_post_ra>
